<compile_context>
chip_gen: v6e
topology: v6e:2x2x1
jax: 0.10.0
libtpu: 0.0.40
codegen_flags: <defaults>
</compile_context>

<pallas_src>
import jax
import jax.numpy as jnp
from jax import lax
from jax.experimental import pallas as pl
from jax.experimental.pallas import tpu as pltpu


def _round_up(x, m):
    return ((x + m - 1) // m) * m


def gmf_kernel(user_ref, item_ref, w_item_ref, b_item_ref, b_aff_ref, out_ref):
    # Item Linear (affine-head weight pre-folded), contracted directly against
    # the natural [TILE_B, bert] block -> feature-major [L, TILE_B], f32 MXU acc.
    item_emb = lax.dot_general(
        w_item_ref[...], item_ref[...],
        dimension_numbers=(((1,), (1,)), ((), ())),
        preferred_element_type=jnp.float32,
    ) + b_item_ref[...]                                       # [L, TILE_B]

    # Small in-kernel transpose of the user tile into feature-major layout
    # (XLU slot has slack; hidden under the item-stream DMA).
    user_t = user_ref[...].T.astype(jnp.float32)              # [L, TILE_B]

    # N=1 affine head: VPU multiply + sublane (XLU) reduce — no degenerate
    # MXU matmul.  Result is a lane-dense [1, TILE_B] row.
    logits = jnp.sum(user_t * item_emb, axis=0, keepdims=True) + b_aff_ref[...]
    out_ref[...] = jax.nn.sigmoid(logits).astype(out_ref.dtype)


def gmf_forward(user_indices, item_embeddings, params, *,
                tile_b=1024, stream_dtype=jnp.bfloat16):
    """params (PyTorch layout): user_table [U, L], w_item [L, bert], b_item [L],
    w_aff [1, L], b_aff [1]."""
    # Embedding lookup: pure row gather, kept as wrapper-side indexing glue.
    user_emb = jnp.take(params["user_table"], user_indices, axis=0)   # [B, L] f32

    B, bert_dim = item_embeddings.shape
    latent_dim = user_emb.shape[1]

    # Lane-dense batch tiles: multiples of 128, capped so (a) tiny batches do
    # not massively over-read past the array and (b) batches >= 256 produce at
    # least two grid steps (keeps both v7x TensorCores busy via "parallel").
    tile_b = max(128, _round_up(tile_b, 128))
    tile_b = min(tile_b, max(128, _round_up((B + 1) // 2, 128)))
    num_tiles = pl.cdiv(B, tile_b)          # ragged tail: Pallas-masked last block

    # Item stream in its natural [B, bert] layout; cast only if needed.
    item_stream = (item_embeddings if item_embeddings.dtype == stream_dtype
                   else item_embeddings.astype(stream_dtype))

    # Fold the N=1 affine-head weight into the item Linear (one-time transform):
    #   logits = sum_l user[l] * (w_aff[l]*W_item[l,:] @ x + w_aff[l]*b_item[l]) + b_aff
    w_aff = params["w_aff"].reshape(latent_dim, 1).astype(jnp.float32)       # [L, 1]
    w_item = (w_aff * params["w_item"]).astype(stream_dtype)                 # [L, bert]
    b_item = (w_aff[:, 0] * params["b_item"]).reshape(latent_dim, 1).astype(jnp.float32)
    b_aff = params["b_aff"].reshape(1, 1).astype(jnp.float32)                # [1, 1]

    stream_bytes = jnp.dtype(stream_dtype).itemsize
    user_bytes = jnp.dtype(user_emb.dtype).itemsize

    # VMEM: double-buffered streams + resident weights + f32 temps, with margin.
    vmem_need = (2 * tile_b * bert_dim * stream_bytes        # item double buffer
                 + 2 * tile_b * latent_dim * user_bytes      # user double buffer
                 + 2 * latent_dim * bert_dim * stream_bytes  # W_item
                 + 2 * tile_b * 4                            # output
                 + 4 * tile_b * latent_dim * 4)              # f32 intermediates
    vmem_limit = int(min(max(2 * vmem_need + (4 << 20), 32 << 20), 48 << 20))

    cost = pl.CostEstimate(
        flops=2 * B * bert_dim * latent_dim + 3 * B * latent_dim,
        transcendentals=B,
        bytes_accessed=(B * bert_dim * stream_bytes          # item stream (dominant)
                        + B * latent_dim * user_bytes        # user stream
                        + B * 4                              # output
                        + latent_dim * bert_dim * stream_bytes
                        + latent_dim * 4 + 4),
    )

    out = pl.pallas_call(
        gmf_kernel,
        out_shape=jax.ShapeDtypeStruct((1, B), jnp.float32),
        grid=(num_tiles,),
        in_specs=[
            pl.BlockSpec((tile_b, latent_dim), lambda i: (i, 0)),    # user tile (natural layout)
            pl.BlockSpec((tile_b, bert_dim), lambda i: (i, 0)),      # item tile (natural, streamed)
            pl.BlockSpec((latent_dim, bert_dim), lambda i: (0, 0)),  # w_aff ⊙ W_item (resident)
            pl.BlockSpec((latent_dim, 1), lambda i: (0, 0)),         # w_aff ⊙ b_item
            pl.BlockSpec((1, 1), lambda i: (0, 0)),                  # b_aff
        ],
        out_specs=pl.BlockSpec((1, tile_b), lambda i: (0, i)),
        compiler_params=pltpu.CompilerParams(
            dimension_semantics=("parallel",),                       # shard tiles across TCs
            vmem_limit_bytes=vmem_limit),
        cost_estimate=cost,
    )(user_emb, item_stream, w_item, b_item, b_aff)

    # Restore the PyTorch [B, 1] shape (row-major, so reshape is a no-op copy).
    return out.reshape(B, 1)


def init_params(key, num_users, bert_dim, latent_dim):
    k1, k2, k3, k4, k5 = jax.random.split(key, 5)
    # PyTorch Linear layout: W is [out_features, in_features], bias is [out_features].
    return {
        "user_table": jax.random.normal(k1, (num_users, latent_dim), jnp.float32),
        "w_item": jax.random.normal(k2, (latent_dim, bert_dim), jnp.float32) * 0.1,
        "b_item": jax.random.normal(k3, (latent_dim,), jnp.float32) * 0.1,
        "w_aff": jax.random.normal(k4, (1, latent_dim), jnp.float32) * 0.1,
        "b_aff": jax.random.normal(k5, (1,), jnp.float32) * 0.1,
    }


if __name__ == "__main__":
    num_users, bert_dim, latent_dim = 10, 32, 16
    batch = 8

    key = jax.random.PRNGKey(0)
    kp, ku, ki = jax.random.split(key, 3)

    params = init_params(kp, num_users, bert_dim, latent_dim)
    user_indices = jax.random.randint(ku, (batch,), 0, num_users, jnp.int32)
    item_embeddings = jax.random.normal(ki, (batch, bert_dim), jnp.float32)

    # Plain-JAX reference (PyTorch semantics, f32).
    ue = jnp.take(params["user_table"], user_indices, axis=0)
    ie = item_embeddings @ params["w_item"].T + params["b_item"]
    ref = jax.nn.sigmoid((ue * ie) @ params["w_aff"].T + params["b_aff"])

    # Tight numerical check with f32 streaming.
    rating_f32 = gmf_forward(user_indices, item_embeddings, params,
                             stream_dtype=jnp.float32)
    jax.block_until_ready(rating_f32)
    assert rating_f32.shape == (batch, 1), rating_f32.shape
    assert jnp.allclose(rating_f32, ref, atol=1e-4, rtol=1e-4), \
        float(jnp.max(jnp.abs(rating_f32 - ref)))

    # Default (optimized) path: bf16 item streaming — expected small precision
    # loss vs the f32 reference, so the tolerance is loosened accordingly.
    rating = gmf_forward(user_indices, item_embeddings, params)
    jax.block_until_ready(rating)
    assert rating.shape == (batch, 1), rating.shape
    assert jnp.allclose(rating, ref, atol=2e-2, rtol=2e-2), \
        float(jnp.max(jnp.abs(rating - ref)))

    print("KERNEL_OK")
</pallas_src>

<mosaic_0001>
module attributes {stable_mosaic.version = 11 : i64} {
  func.func @gmf_kernel(%arg0: i32, %arg1: memref<128x16xf32, #tpu.memory_space<vmem>>, %arg2: memref<128x32xf32, #tpu.memory_space<vmem>>, %arg3: memref<16x32xf32, #tpu.memory_space<vmem>>, %arg4: memref<16x1xf32, #tpu.memory_space<vmem>>, %arg5: memref<1x1xf32, #tpu.memory_space<vmem>>, %arg6: memref<1x128xf32, #tpu.memory_space<vmem>>) attributes {dimension_semantics = [#tpu.dimension_semantics<parallel>], iteration_bounds = array<i64: 1>, scalar_prefetch = 0 : i64, scratch_operands = 0 : i64, tpu.core_type = #tpu.core_type<tc>, window_params = [{transform_indices = @transform_0, window_bounds = array<i64: 128, 16>}, {transform_indices = @transform_1, window_bounds = array<i64: 128, 32>}, {pipeline_mode = #tpu.pipeline_mode<synchronous>, transform_indices = @transform_2, window_bounds = array<i64: 16, 32>}, {pipeline_mode = #tpu.pipeline_mode<synchronous>, transform_indices = @transform_3, window_bounds = array<i64: 16, 1>}, {pipeline_mode = #tpu.pipeline_mode<synchronous>, transform_indices = @transform_4, window_bounds = array<i64: 1, 1>}, {transform_indices = @transform_5, window_bounds = array<i64: 1, 128>}]} {
    %c0 = arith.constant 0 : index
    %c0_0 = arith.constant 0 : index
    %0 = vector.load %arg3[%c0, %c0_0] : memref<16x32xf32, #tpu.memory_space<vmem>>, vector<16x32xf32>
    %c0_1 = arith.constant 0 : index
    %c0_2 = arith.constant 0 : index
    %1 = vector.load %arg2[%c0_1, %c0_2] : memref<128x32xf32, #tpu.memory_space<vmem>>, vector<128x32xf32>
    %cst = arith.constant dense<0.000000e+00> : vector<16x128xf32>
    %2 = tpu.matmul %0, %1, %cst {dimension_numbers = #tpu.dot_dimension_numbers<[1], [1], [0], [0], [0, 0, 1, 0], [], []>} : vector<16x32xf32>, vector<128x32xf32>, vector<16x128xf32> -> vector<16x128xf32>
    %c0_3 = arith.constant 0 : index
    %c0_4 = arith.constant 0 : index
    %3 = vector.load %arg4[%c0_3, %c0_4] : memref<16x1xf32, #tpu.memory_space<vmem>>, vector<16x1xf32>
    %4 = vector.broadcast %3 : vector<16x1xf32> to vector<16x128xf32>
    %5 = arith.addf %2, %4 : vector<16x128xf32>
    %c0_5 = arith.constant 0 : index
    %c0_6 = arith.constant 0 : index
    %6 = vector.load %arg1[%c0_5, %c0_6] : memref<128x16xf32, #tpu.memory_space<vmem>>, vector<128x16xf32>
    %7 = tpu.transpose %6, [1, 0] : vector<128x16xf32> -> vector<16x128xf32>
    %8 = arith.mulf %7, %5 : vector<16x128xf32>
    %cst_7 = arith.constant dense<0.000000e+00> : vector<128xf32>
    %9 = vector.multi_reduction <add>, %8, %cst_7 [0] : vector<16x128xf32> to vector<128xf32>
    %10 = vector.shape_cast %9 : vector<128xf32> to vector<1x128xf32>
    %c0_8 = arith.constant 0 : index
    %c0_9 = arith.constant 0 : index
    %11 = vector.load %arg5[%c0_8, %c0_9] : memref<1x1xf32, #tpu.memory_space<vmem>>, vector<1x1xf32>
    %12 = vector.broadcast %11 : vector<1x1xf32> to vector<1x128xf32>
    %13 = arith.addf %10, %12 : vector<1x128xf32>
    %14 = arith.negf %13 : vector<1x128xf32>
    %15 = math.exp %14 : vector<1x128xf32>
    %cst_10 = arith.constant 1.000000e+00 : f32
    %16 = vector.broadcast %cst_10 : f32 to vector<1x128xf32>
    %17 = arith.addf %16, %15 : vector<1x128xf32>
    %18 = arith.divf %16, %17 : vector<1x128xf32>
    %c0_11 = arith.constant 0 : index
    %c0_12 = arith.constant 0 : index
    %19 = vector.load %arg6[%c0_11, %c0_12] : memref<1x128xf32, #tpu.memory_space<vmem>>, vector<1x128xf32>
    tpu.vector_store %arg6[%c0_11, %c0_12], %18 {strides = array<i32>} : memref<1x128xf32, #tpu.memory_space<vmem>>, vector<1x128xf32>,
    return
  }
  func.func @transform_0(%arg0: i32) -> (i32, i32) {
    %c0_i32 = arith.constant 0 : i32
    %c0_i32_0 = arith.constant 0 : i32
    return %arg0, %c0_i32 : i32, i32
  }
  func.func @transform_1(%arg0: i32) -> (i32, i32) {
    %c0_i32 = arith.constant 0 : i32
    %c0_i32_0 = arith.constant 0 : i32
    return %arg0, %c0_i32 : i32, i32
  }
  func.func @transform_2(%arg0: i32) -> (i32, i32) {
    %c0_i32 = arith.constant 0 : i32
    %c0_i32_0 = arith.constant 0 : i32
    %c0_i32_1 = arith.constant 0 : i32
    return %c0_i32, %c0_i32_0 : i32, i32
  }
  func.func @transform_3(%arg0: i32) -> (i32, i32) {
    %c0_i32 = arith.constant 0 : i32
    %c0_i32_0 = arith.constant 0 : i32
    %c0_i32_1 = arith.constant 0 : i32
    return %c0_i32, %c0_i32_0 : i32, i32
  }
  func.func @transform_4(%arg0: i32) -> (i32, i32) {
    %c0_i32 = arith.constant 0 : i32
    %c0_i32_0 = arith.constant 0 : i32
    %c0_i32_1 = arith.constant 0 : i32
    return %c0_i32, %c0_i32_0 : i32, i32
  }
  func.func @transform_5(%arg0: i32) -> (i32, i32) {
    %c0_i32 = arith.constant 0 : i32
    %c0_i32_0 = arith.constant 0 : i32
    return %c0_i32, %arg0 : i32, i32
  }
}

</mosaic_0001>

<bundles_post_ra>
// kernel: tpu_custom_call.1
= control target key start
LH: loop header
LB: loop body
LE: loop exit
PB: predicated region body
PF: predicated region fallthrough
CT: control target
= control target key end

     0   :  { %s546_s0 = inlined_call_operand.hbm [shape: f32[8,16], index: 0, kind: input, shape index: {}]   ;;  %s547_s1 = inlined_call_operand.hbm [shape: f32[8,32], index: 1, kind: input, shape index: {}]   ;;  %s548_s2 = inlined_call_operand.vmem [shape: f32[16,32], index: 2, kind: input, shape index: {}]   ;;  %s549_s3 = inlined_call_operand.vmem [shape: f32[16,1], index: 3, kind: input, shape index: {}]   ;;  %s550_s4 = inlined_call_operand.<no memory space> [shape: f32[1,1], index: 4, kind: input, shape index: {}]   ;;  %s551_s5 = inlined_call_operand.hbm [shape: f32[1,8], index: 5, kind: output, shape index: {}]  }
   0x1   :  { %v10_v0 = vstv %s550_s4 }
   0x2   :  { %11 = vst [vmem:[#allocation2] sm:$0x1] %v10_v0 }
   0x3   :  { %12 = vsyncpa [#allocation4], 0 }
   0x4   :  { %13 = vsyncpa [#allocation7], 0 }
   0x5   :  { %14 = vsyncpa [#allocation5], 0 }
   0x6   :  { %19 = vsyncadd [#allocation4], 1920  ;;  %s452_s20 = smov [#allocation3]  }
   0x7   :  { %s20_s21 = sshll.u32 %s452_s20, 4  ;;  %s21_s21 = int_to_ptr.vmem [resolvable:$true] %s20_s21 }
   0x8   :  { %s394_s22 = scalar_lea.vmem %s21_s21, 128  ;;  %s398_s23 = scalar_lea.vmem %s21_s21, 2048 }
   0x9   :  { %p395_p0 = scmp.ne.s32.totalorder %s21_s21, %s394_s22  ;;  %p399_p1 = scmp.lt.s32.totalorder %s21_s21, %s21_s21 }
   0xa   :  { %p400_p2 = scmp.lt.s32.totalorder %s398_s23, %s394_s22 }
   0xc   :  { %p401_p3 = por %p400_p2, %p399_p1 }
   0xe   :  { %p402_p4 = pnand %p401_p3, %p395_p0 }
  0x10   :  { %405 = shalt.err (!%p402_p4)
}
  0x11   :  { %s453_s24 = smov 128   ;;  %s454_s25 = smov 8  }
  0x12   :  { %26 = dma.hbm_to_vmem [thread:$0]  %s546_s0, 128, %s21_s21, [#allocation4], %s453_s24, %s453_s24, %s454_s25  }
  0x13   :  { %31 = vsyncadd [#allocation7], 1920  ;;  %s455_s27 = smov [#allocation6]  }
  0x14   :  { %s32_s28 = sshll.u32 %s455_s27, 4  ;;  %s33_s28 = int_to_ptr.vmem [resolvable:$true] %s32_s28 }
  0x15   :  { %s414_s29 = scalar_lea.vmem %s33_s28, 128  ;;  %s418_s30 = scalar_lea.vmem %s33_s28, 2048 }
  0x16   :  { %p415_p5 = scmp.ne.s32.totalorder %s33_s28, %s414_s29  ;;  %p419_p6 = scmp.lt.s32.totalorder %s33_s28, %s33_s28 }
  0x17   :  { %p420_p7 = scmp.lt.s32.totalorder %s418_s30, %s414_s29 }
  0x19   :  { %p421_p8 = por %p420_p7, %p419_p6 }
  0x1b   :  { %p422_p9 = pnand %p421_p8, %p415_p5 }
  0x1d   :  { %425 = shalt.err (!%p422_p9)
}
  0x1e   :  { %38 = dma.hbm_to_vmem [thread:$0]  %s547_s1, 128, %s33_s28, [#allocation7], %s453_s24, %s453_s24, %s454_s25  }
  0x1f   :  { %446 = dma.done.wait [#allocation4], 2048  }
  0x20   :  { %447 = vsyncadd [#allocation4], 4294965248 }
  0x21   :  { %448 = dma.done.wait [#allocation7], 2048  }
  0x22   :  { %449 = vsyncadd [#allocation7], 4294965248  ;;  %v456_v1 = vmov 0   ;;  %vm81_vm0 = vcmask 261120   ;;  %v68_v2 = vld [vmem:[#allocation6 + $0x78] sm:$0xff]  ;;  %v67_v3 = vld [vmem:[#allocation6 + $0x70] sm:$0xff]  ;;  %v274_v50 = vlaneseq }
  0x23   :  { %381 = vset.pattern.permute.xlu1 %v456_v1  ;;  %380 = vset.pattern.permute.xlu0 %v456_v1  ;;  %v66_v4 = vld [vmem:[#allocation6 + $0x68] sm:$0xff]  ;;  %v51_v5 = vld [vmem:[%s548_s2] sm:$0xff]  ;;  %v63_v11 = vld [vmem:[#allocation6 + $0x50] sm:$0xff] }
  0x24   :  { %339 = vmatprep.subr.msk.mxu0 %vm81_vm0, %v68_v2  ;;  %371 = vmatprep.mubr.msk.f32.mxu0 %vm81_vm0, %v51_v5  ;;  %v268_v6 = vld [vmem:[#allocation2] sm:$0x1]  ;;  %v65_v8 = vld [vmem:[#allocation6 + $0x60] sm:$0xff]  ;;  %v62_v12 = vld [vmem:[#allocation6 + $0x48] sm:$0xff]  ;;  %v275_v53 = vshrl.u32 %v274_v50, 7 }
  0x25   :  { %340 = vmatpush3.xpose.msk.msra.mxu0 %vm81_vm0, %v68_v2  ;;  %v69_v7 = vld [vmem:[%s549_s3] sm:$0xff]  ;;  %271 = vperm.xlu1 %381, %v268_v6   ;;  %v70_v9 = vld [vmem:[%s549_s3 + $0x8] sm:$0xff]  ;;  %v59_v15 = vld [vmem:[#allocation6 + $0x30] sm:$0xff] }
  0x26   :  { %341 = vmatprep.subr.msk.mxu0 %vm81_vm0, %v67_v3  ;;  %73 = vperm.xlu0 %380, %v69_v7   ;;  %v64_v10 = vld [vmem:[#allocation6 + $0x58] sm:$0xff]  ;;  %v61_v13 = vld [vmem:[#allocation6 + $0x40] sm:$0xff]  ;;  %v58_v16 = vld [vmem:[#allocation6 + $0x28] sm:$0xff]  ;;  %v276_v56 = vsub.s32 0, %v275_v53 }
  0x27   :  { %v60_v14 = vld [vmem:[#allocation6 + $0x38] sm:$0xff]  ;;  %v57_v17 = vld [vmem:[#allocation6 + $0x20] sm:$0xff]  ;;  %v55_v20 = vld [vmem:[#allocation6 + $0x10] sm:$0xff] }
  0x28   :  { %v56_v18 = vld [vmem:[#allocation6 + $0x18] sm:$0xff]  ;;  %v211_v19 = vld [vmem:[#allocation3] sm:$0xff]  ;;  %v212_v21 = vld [vmem:[#allocation3 + $0x8] sm:$0xff] }
  0x29   :  { %342 = vmatpush3.xpose.msk.msra.mxu0 %vm81_vm0, %v67_v3  ;;  %v54_v22 = vld [vmem:[#allocation6 + $0x8] sm:$0xff]  ;;  %v213_v23 = vld [vmem:[#allocation3 + $0x10] sm:$0xff]  ;;  %v53_v24 = vld [vmem:[#allocation6] sm:$0xff] }
  0x2a   :  { %343 = vmatprep.subr.msk.mxu0 %vm81_vm0, %v66_v4  ;;  %78 = vperm.xlu0 %380, %v70_v9   ;;  %v214_v25 = vld [vmem:[#allocation3 + $0x18] sm:$0xff]  ;;  %v215_v26 = vld [vmem:[#allocation3 + $0x20] sm:$0xff]  ;;  %v216_v28 = vld [vmem:[#allocation3 + $0x28] sm:$0xff] }
  0x2b   :  { %v52_v27 = vld [vmem:[%s548_s2 + $0x8] sm:$0xff]  ;;  %v217_v29 = vld [vmem:[#allocation3 + $0x30] sm:$0xff]  ;;  %v218_v30 = vld [vmem:[#allocation3 + $0x38] sm:$0xff]  ;;  %s457_s2 = smov [#allocation8]  }
  0x2c   :  { %v219_v31 = vld [vmem:[#allocation3 + $0x40] sm:$0xff]  ;;  %v220_v32 = vld [vmem:[#allocation3 + $0x48] sm:$0xff]  ;;  %v221_v33 = vld [vmem:[#allocation3 + $0x50] sm:$0xff]  ;;  %s292_s13 = sshll.u32 %s457_s2, 4  ;;  %s293_s13 = int_to_ptr.vmem [resolvable:$true] %s292_s13 }
  0x2d   :  { %344 = vmatpush3.xpose.msk.msra.mxu0 %vm81_vm0, %v66_v4  ;;  %v222_v34 = vld [vmem:[#allocation3 + $0x58] sm:$0xff]  ;;  %v223_v35 = vld [vmem:[#allocation3 + $0x60] sm:$0xff]  ;;  %v224_v36 = vld [vmem:[#allocation3 + $0x68] sm:$0xff]  ;;  %s426_s14 = scalar_lea.vmem %s293_s13, 16  ;;  %s430_s15 = scalar_lea.vmem %s293_s13, 32 }
  0x2e   :  { %345 = vmatprep.subr.msk.mxu0 %vm81_vm0, %v65_v8  ;;  %v225_v37 = vld [vmem:[#allocation3 + $0x70] sm:$0xff]  ;;  %v226_v38 = vld [vmem:[#allocation3 + $0x78] sm:$0xff]  ;;  %p427_p10 = scmp.ne.s32.totalorder %s293_s13, %s426_s14  ;;  %p431_p11 = scmp.lt.s32.totalorder %s293_s13, %s293_s13 }
  0x2f   :  { %p432_p12 = scmp.lt.s32.totalorder %s430_s15, %s426_s14 }
  0x31   :  { %346 = vmatpush3.xpose.msk.msra.mxu0 %vm81_vm0, %v65_v8  ;;  %p433_p13 = por %p432_p12, %p431_p11 }
  0x32   :  { %347 = vmatprep.subr.msk.mxu0 %vm81_vm0, %v64_v10 }
  0x33   :  { %p434_p0 = pnand %p433_p13, %p427_p10 }
  0x35   :  { %348 = vmatpush3.xpose.msk.msra.mxu0 %vm81_vm0, %v64_v10 }
  0x36   :  { %349 = vmatprep.subr.msk.mxu0 %vm81_vm0, %v63_v11 }
  0x39   :  { %350 = vmatpush3.xpose.msk.msra.mxu0 %vm81_vm0, %v63_v11 }
  0x3a   :  { %351 = vmatprep.subr.msk.mxu0 %vm81_vm0, %v62_v12 }
  0x3d   :  { %352 = vmatpush3.xpose.msk.msra.mxu0 %vm81_vm0, %v62_v12 }
  0x3e   :  { %353 = vmatprep.subr.msk.mxu0 %vm81_vm0, %v61_v13 }
  0x41   :  { %354 = vmatpush3.xpose.msk.msra.mxu0 %vm81_vm0, %v61_v13 }
  0x42   :  { %355 = vmatprep.subr.msk.mxu0 %vm81_vm0, %v60_v14 }
  0x45   :  { %356 = vmatpush3.xpose.msk.msra.mxu0 %vm81_vm0, %v60_v14 }
  0x46   :  { %357 = vmatprep.subr.msk.mxu0 %vm81_vm0, %v59_v15 }
  0x49   :  { %358 = vmatpush3.xpose.msk.msra.mxu0 %vm81_vm0, %v59_v15 }
  0x4a   :  { %359 = vmatprep.subr.msk.mxu0 %vm81_vm0, %v58_v16 }
  0x4d   :  { %360 = vmatpush3.xpose.msk.msra.mxu0 %vm81_vm0, %v58_v16 }
  0x4e   :  { %361 = vmatprep.subr.msk.mxu0 %vm81_vm0, %v57_v17  ;;  %227 = vxpose.xlu1.b32.start [1/16] (narrow) %v211_v19, 16 }
  0x51   :  { %362 = vmatpush3.xpose.msk.msra.mxu0 %vm81_vm0, %v57_v17 }
  0x52   :  { %363 = vmatprep.subr.msk.mxu0 %vm81_vm0, %v56_v18  ;;  %228 = vxpose.xlu1.b32.cont [2/16] (narrow) %v212_v21, 16 }
  0x55   :  { %364 = vmatpush3.xpose.msk.msra.mxu0 %vm81_vm0, %v56_v18 }
  0x56   :  { %365 = vmatprep.subr.msk.mxu0 %vm81_vm0, %v55_v20  ;;  %229 = vxpose.xlu1.b32.cont [3/16] (narrow) %v213_v23, 16 }
  0x59   :  { %366 = vmatpush3.xpose.msk.msra.mxu0 %vm81_vm0, %v55_v20 }
  0x5a   :  { %367 = vmatprep.subr.msk.mxu0 %vm81_vm0, %v54_v22  ;;  %230 = vxpose.xlu1.b32.cont [4/16] (narrow) %v214_v25, 16 }
  0x5d   :  { %368 = vmatpush3.xpose.msk.msra.mxu0 %vm81_vm0, %v54_v22 }
  0x5e   :  { %369 = vmatprep.subr.msk.mxu0 %vm81_vm0, %v53_v24  ;;  %231 = vxpose.xlu1.b32.cont [5/16] (narrow) %v215_v26, 16 }
  0x61   :  { %370 = vmatpush3.xpose.msk.msra.mxu0 %vm81_vm0, %v53_v24 }
  0x62   :  { %232 = vxpose.xlu1.b32.cont [6/16] (narrow) %v216_v28, 16 }
  0x64   :  { %372 = vmatmul.mubr.msk.f32.vlgmr.msra.gmra.mxu0 %vm81_vm0, %v52_v27 }
  0x66   :  { %233 = vxpose.xlu1.b32.cont [7/16] (narrow) %v217_v29, 16 }
  0x6a   :  { %234 = vxpose.xlu1.b32.cont [8/16] (narrow) %v218_v30, 16 }
  0x6e   :  { %235 = vxpose.xlu1.b32.cont [9/16] (narrow) %v219_v31, 16 }
  0x72   :  { %236 = vxpose.xlu1.b32.cont [10/16] (narrow) %v220_v32, 16 }
  0x76   :  { %237 = vxpose.xlu1.b32.cont [11/16] (narrow) %v221_v33, 16 }
  0x7a   :  { %238 = vxpose.xlu1.b32.cont [12/16] (narrow) %v222_v34, 16 }
  0x7e   :  { %239 = vxpose.xlu1.b32.cont [13/16] (narrow) %v223_v35, 16 }
  0x82   :  { %240 = vxpose.xlu1.b32.cont [14/16] (narrow) %v224_v36, 16 }
  0x86   :  { %241 = vxpose.xlu1.b32.cont [15/16] (narrow) %v225_v37, 16 }
  0x8a   :  { %242 = vxpose.xlu1.b32.end [16/16] (narrow) %v226_v38, 16 }
  0xa0   :  { %v272_v39 = vpop.permute.xlu1 %271 }
  0xa1   :  { %v74_v40 = vpop.permute.xlu0 %73  ;;  %v277_v59 = vrot.slane %v272_v39, %v276_v56 }
  0xa5   :  { %v79_v42 = vpop.permute.xlu0 %78 }
  0xca   :  { %v243_v41 = vpop.trf.xlu1 }
  0xce   :  { %v244_v45 = vpop.trf.xlu1 }
 0x124   :  { %v373_v43 = vpop.f32.mrf.mxu0 }
 0x125   :  { %v208_v44 = vadd.f32 %v373_v43, %v79_v42 }
 0x126   :  { %v202_v46 = vpop.f32.mrf.mxu0 }
 0x127   :  { %v203_v47 = vadd.f32 %v202_v46, %v74_v40  ;;  %v260_v48 = vmul.f32 %v244_v45, %v208_v44 }
 0x129   :  { %v259_v49 = vmul.f32 %v243_v41, %v203_v47 }
 0x12b   :  { %v261_v51 = vadd.f32 %v260_v48, %v259_v49 }
 0x12d   :  { %v262_v52 = vrot.slane %v261_v51, 4 }
 0x12f   :  { %v263_v54 = vadd.f32 %v262_v52, %v261_v51 }
 0x131   :  { %v264_v55 = vrot.slane %v263_v54, 2 }
 0x133   :  { %v265_v57 = vadd.f32 %v264_v55, %v263_v54 }
 0x135   :  { %v266_v58 = vrot.slane %v265_v57, 1 }
 0x137   :  { %v267_v60 = vadd.f32 %v266_v58, %v265_v57 }
 0x139   :  { %v278_v61 = vadd.f32 %v277_v59, %v267_v60 }
 0x13b   :  { %v320_v62 = vmul.f32 -1.442695, %v278_v61 }
 0x13d   :  { %382 = vpow2.f32 %v320_v62 }
 0x14a   :  { %v383_v63 = vpop.eup %382 }
 0x14b   :  { %v282_v0 = vadd.f32 1.0, %v383_v63 }
 0x14d   :  { %384 = vrcp.f32 %v282_v0 }
 0x15a   :  { %v385_v1 = vpop.eup %384 }
 0x15b   :  { %285 = vst [vmem:[#allocation8] sm:$0x1] %v385_v1 }
 0x15c   :  { %437 = shalt.err (!%p434_p0)
}
 0x15d   :  { %295 = dma.vmem_to_hbm [thread:$0]  %s293_s13, 16, %s551_s5, [#allocation5]  }
 0x15e   :  { %450 = dma.done.wait [#allocation5], 16  }
 0x15f   :  { %451 = vsyncadd [#allocation5], 4294967280 }
 0x160   :  { %299 = vsyncpa [#allocation4], 1 }
 0x161   :  { %300 = vsyncpa [#allocation7], 1 }
 0x162   :  { %301 = vsyncpa [#allocation5], 1 }

</bundles_post_ra>
